<compile_context>
chip_gen: v7x
topology: tpu7x:2x2x1
jax: 0.10.0
libtpu: 0.0.40
codegen_flags: <defaults>
</compile_context>

<pallas_src>
import math

import jax
import jax.numpy as jnp
from jax import lax
from jax.experimental import pallas as pl
from jax.experimental.pallas import tpu as pltpu


def _round_up(x, m):
    return ((x + m - 1) // m) * m


# ----------------------------------------------------------------------------
# Kernel 1: XWs = D^{-1/2} (X @ W), computed once (K = in_dim is tiny).
# ----------------------------------------------------------------------------
def _xw_kernel(x_ref, w_ref, dinv_ref, o_ref):
    xw = jnp.dot(x_ref[...], w_ref[...], preferred_element_type=jnp.float32)
    o_ref[...] = (dinv_ref[...] * xw).astype(o_ref.dtype)


def _scaled_xw(x_p, w_p, dinv_col, tk, tn, out_dtype, vmem_limit):
    Kp, in_dim = x_p.shape
    Dp = w_p.shape[1]
    return pl.pallas_call(
        _xw_kernel,
        out_shape=jax.ShapeDtypeStruct((Kp, Dp), out_dtype),
        grid=(Kp // tk, Dp // tn),
        in_specs=[
            pl.BlockSpec((tk, in_dim), lambda k, j: (k, 0)),
            pl.BlockSpec((in_dim, tn), lambda k, j: (0, j)),
            pl.BlockSpec((tk, 1), lambda k, j: (k, 0)),
        ],
        out_specs=pl.BlockSpec((tk, tn), lambda k, j: (k, j)),
        compiler_params=pltpu.CompilerParams(
            dimension_semantics=("parallel", "parallel"),
            vmem_limit_bytes=vmem_limit),
    )(x_p, w_p, dinv_col)


# ----------------------------------------------------------------------------
# Kernel 2: tiled GCN aggregation  h = D^{-1/2} @ (A @ XWs)
#   A is the unnormalized self-loop-augmented adjacency (bf16, exact);
#   XWs already carries the right D^{-1/2}; the left D^{-1/2} is applied at
#   the last-k writeback.  Accumulation happens directly in the resident f32
#   output tile (no extra scratch copy / VMEM).
# ----------------------------------------------------------------------------
def _gcn_kernel(dinv_ref, a_ref, xw_ref, o_ref):
    k = pl.program_id(2)

    @pl.when(k == 0)
    def _():
        o_ref[...] = jnp.zeros_like(o_ref)

    o_ref[...] += jnp.dot(a_ref[...], xw_ref[...],
                          preferred_element_type=jnp.float32)

    @pl.when(k == pl.num_programs(2) - 1)
    def _():
        o_ref[...] = dinv_ref[...] * o_ref[...]


def _gcn_matmul(a_p, xw_p, dinv_row, tm, tn, tk, vmem_limit):
    Mp, Kp = a_p.shape
    Dp = xw_p.shape[1]
    return pl.pallas_call(
        _gcn_kernel,
        out_shape=jax.ShapeDtypeStruct((Mp, Dp), jnp.float32),
        grid=(Mp // tm, Dp // tn, Kp // tk),
        in_specs=[
            pl.BlockSpec((tm, 1), lambda i, j, k: (i, 0)),    # D^{-1/2} rows
            pl.BlockSpec((tm, tk), lambda i, j, k: (i, k)),   # A tile (bf16)
            pl.BlockSpec((tk, tn), lambda i, j, k: (k, j)),   # XWs tile (bf16)
        ],
        out_specs=pl.BlockSpec((tm, tn), lambda i, j, k: (i, j)),
        compiler_params=pltpu.CompilerParams(
            dimension_semantics=("parallel", "parallel", "arbitrary"),
            vmem_limit_bytes=vmem_limit),
    )(dinv_row, a_p, xw_p)


def _choose_gcn_tiles(N, D, budget):
    """Pick (tm, tk, tn): tn = full padded width when it fits, big tk/tm."""
    Dp0 = _round_up(D, 128)
    tn = Dp0 if Dp0 <= 4096 else 2048
    tm = min(512, _round_up(N, 8))
    tk = min(2048, _round_up(N, 128))

    def need(tm_, tk_, tn_):
        return (2 * tm_ * tk_ * 2        # A tiles, bf16, double-buffered
                + 2 * tk_ * tn_ * 2      # XWs tiles, bf16, double-buffered
                + 2 * tm_ * tn_ * 4      # resident f32 output tile (+ spare)
                + 2 * tm_ * 4)           # dinv rows

    while need(tm, tk, tn) > budget and tk > 128:
        tk = max(128, _round_up(tk // 2, 128))
    while need(tm, tk, tn) > budget and tn > 256:
        tn = max(256, _round_up(tn // 2, 128))
    while need(tm, tk, tn) > budget and tm > 64:
        tm = max(64, _round_up(tm // 2, 8))
    return tm, tk, tn


# ----------------------------------------------------------------------------
# Kernel 3: multi-step IF neuron, tt timesteps per grid step, lane-dense I/O.
#   v[t] = v[t-1] + h          ; o[t] = (v[t] >= v_th)
#   v[t] = v[t] - o[t] * v_th  (soft reset)
#   z[t] = z[t-1] + o[t] * (h * step_size)   (Euclidean exp-map update)
# ----------------------------------------------------------------------------
def _make_neuron_kernel(v_threshold, step_size, tt):
    def neuron_kernel(h_ref, o_ref, z_ref, v_scr, z_scr):
        tb = pl.program_id(1)

        @pl.when(tb == 0)
        def _():
            v_scr[...] = jnp.zeros_like(v_scr)
            z_scr[...] = jnp.zeros_like(z_scr)   # manifold.origin -> zeros

        h = h_ref[...].astype(jnp.float32)
        hs = h * step_size                       # hoisted: constant over tt

        def body(t, carry):
            v = v_scr[...] + h
            o = (v >= v_threshold).astype(jnp.float32)
            v_new = v - o * v_threshold
            z_new = z_scr[...] + o * hs
            v_scr[...] = v_new
            z_scr[...] = z_new
            o_ref[t] = o.astype(o_ref.dtype)
            z_ref[t] = z_new.astype(z_ref.dtype)
            return carry

        lax.fori_loop(0, tt, body, 0, unroll=True)

    return neuron_kernel


def _neuron_seq(h2, Tp, v_threshold, step_size, tt, tr, out_dtype):
    Rp, C = h2.shape
    return pl.pallas_call(
        _make_neuron_kernel(v_threshold, step_size, tt),
        out_shape=(
            jax.ShapeDtypeStruct((Tp, Rp, C), out_dtype),   # o_seq (folded)
            jax.ShapeDtypeStruct((Tp, Rp, C), out_dtype),   # z_seq (folded)
        ),
        grid=(Rp // tr, Tp // tt),
        in_specs=[pl.BlockSpec((tr, C), lambda r, tb: (r, 0))],
        out_specs=(
            pl.BlockSpec((tt, tr, C), lambda r, tb: (tb, r, 0)),
            pl.BlockSpec((tt, tr, C), lambda r, tb: (tb, r, 0)),
        ),
        scratch_shapes=[
            pltpu.VMEM((tr, C), jnp.float32),   # membrane potential v
            pltpu.VMEM((tr, C), jnp.float32),   # manifold state z
        ],
        compiler_params=pltpu.CompilerParams(
            dimension_semantics=("parallel", "arbitrary")),
    )(h2)


def _choose_tr(R):
    """Largest divisor of R that is a multiple of 8 (<=512) so Rp == R."""
    best = 0
    d = 8
    while d <= min(R, 512):
        if R % d == 0:
            best = d
        d += 8
    if best:
        return best, R
    if R <= 1024:
        return R, R                   # full-extent block is always legal
    return 256, _round_up(R, 256)     # rare fallback: pad R, trim afterwards


def _choose_tt(T):
    """Largest divisor of T (<=16); pad T to a multiple of 8 if it is tiny."""
    best = 1
    for d in range(1, min(T, 16) + 1):
        if T % d == 0:
            best = d
    if best >= 4 or T < 4:
        return best, T
    return 8, _round_up(T, 8)


# ----------------------------------------------------------------------------
# RSEncoderLayer.forward equivalent
# ----------------------------------------------------------------------------
def rs_encoder_layer_forward(x, edge_index, w, *, T, v_threshold=1.0,
                             step_size=0.1, matmul_dtype=jnp.bfloat16,
                             neuron_out_dtype=jnp.bfloat16):
    assert T >= 1, "T must be >= 1"
    N, _ = x.shape
    D = w.shape[1]
    f32 = jnp.float32

    # ---- per-generation VMEM budget (64 MiB v7x, 128 MiB v5e/v6e) ----------
    try:
        vmem_cap = int(pltpu.get_tpu_info().vmem_capacity_bytes)
    except Exception:
        vmem_cap = 64 * 1024 * 1024                      # conservative (v7x)
    budget = int(vmem_cap * 0.55)
    vmem_limit = min(100 * 1024 * 1024, int(vmem_cap * 0.75))

    tm, tk, tn = _choose_gcn_tiles(N, D, budget)
    Mp = _round_up(N, tm)
    Kp = _round_up(N, tk)
    Dp = _round_up(D, tn)
    # Keep >= 2 blocks on the parallel (i, j) axes when cheap (v7x: 2 TCs).
    if (Mp // tm) * (Dp // tn) == 1 and tm % 16 == 0 and tm >= 16:
        tm //= 2

    # ---- normalized-adjacency pieces (DropEdge / Dropout p=0 -> identity) ---
    src, dst = edge_index[0], edge_index[1]
    deg = jnp.zeros((N,), f32).at[dst].add(jnp.ones(src.shape, f32)) + 1.0
    dinv = lax.rsqrt(deg)                                # deg >= 1 (self loop)

    # Build A (+ self loops) directly in padded shape & matmul dtype
    # (bf16 duplicate-edge counts are exact up to 256).
    diag = jnp.arange(N, dtype=jnp.int32)
    a_p = jnp.zeros((Mp, Kp), matmul_dtype)
    a_p = a_p.at[dst, src].add(jnp.ones(src.shape, matmul_dtype))
    a_p = a_p.at[diag, diag].add(jnp.ones((N,), matmul_dtype))

    dinv_col = jnp.pad(dinv, (0, Kp - N)).reshape(Kp, 1)
    dinv_row = jnp.pad(dinv, (0, Mp - N)).reshape(Mp, 1)
    x_p = jnp.pad(x.astype(f32), ((0, Kp - N), (0, 0)))
    w_p = jnp.pad(w.astype(f32), ((0, 0), (0, Dp - D)))

    # ---- kernel 1: XWs computed once (tiny K), right D^{-1/2} fused, bf16 ---
    if Kp % 512 == 0:
        tk_xw = 512
    elif Kp % 256 == 0:
        tk_xw = 256
    else:
        tk_xw = 128
    xw_p = _scaled_xw(x_p, w_p, dinv_col, tk_xw, tn, matmul_dtype, vmem_limit)

    # ---- kernel 2: h = D^{-1/2} (A+I) D^{-1/2} (X W); bf16 feed, f32 acc ----
    h_p = _gcn_matmul(a_p, xw_p, dinv_row, tm, tn, tk, vmem_limit)
    h = h_p[:N, :D]
    x_step = h * step_size                               # returned as-is

    # ---- kernel 3: multi-step spiking neuron over T, lane-dense fold --------
    total = N * D
    totalp = _round_up(total, 128)
    C = 128
    R = totalp // C
    h_flat = h.reshape(-1)
    if totalp != total:
        h_flat = jnp.pad(h_flat, (0, totalp - total))
    tr, Rp = _choose_tr(R)
    h2 = h_flat.reshape(R, C)
    if Rp != R:
        h2 = jnp.pad(h2, ((0, Rp - R), (0, 0)))
    # >= 2 row blocks when cheaply possible (v7x megacore)
    if Rp // tr == 1 and tr % 16 == 0:
        tr //= 2

    tt, Tp = _choose_tt(T)
    o2, z2 = _neuron_seq(h2, Tp, v_threshold, step_size, tt, tr,
                         neuron_out_dtype)

    # Un-pad (all slices/reshapes below are identities in the common case).
    o_seq = o2[:T, :R].reshape(T, -1)[:, :total].reshape(T, N, D)
    z_seq = z2[:T, :R].reshape(T, -1)[:, :total].reshape(T, N, D)
    return o_seq, z_seq, x_step


if __name__ == "__main__":
    # Small, deterministic example shapes.
    N, in_dim, out_dim, T = 16, 8, 32, 4
    key = jax.random.PRNGKey(0)
    kx, kw = jax.random.split(key)

    x = jax.random.normal(kx, (N, in_dim), dtype=jnp.float32)
    # Glorot-ish deterministic weight init (GCNConv(in_dim, out_dim), bias=False).
    limit = (6.0 / (in_dim + out_dim)) ** 0.5
    w = jax.random.uniform(kw, (in_dim, out_dim), jnp.float32, -limit, limit)

    # Simple bidirectional ring graph edge_index [2, E].
    idx = jnp.arange(N, dtype=jnp.int32)
    src = jnp.concatenate([idx, (idx + 1) % N])
    dst = jnp.concatenate([(idx + 1) % N, idx])
    edge_index = jnp.stack([src, dst], axis=0)

    o_seq, z_seq, xs = rs_encoder_layer_forward(
        x, edge_index, w, T=T, v_threshold=1.0, step_size=0.1)
    jax.block_until_ready((o_seq, z_seq, xs))

    assert o_seq.shape == (T, N, out_dim)
    assert z_seq.shape == (T, N, out_dim)
    assert xs.shape == (N, out_dim)
    print("KERNEL_OK")
</pallas_src>

<mosaic_0001>
module attributes {stable_mosaic.version = 11 : i64} {
  func.func @_xw_kernel(%arg0: i32, %arg1: i32, %arg2: memref<128x8xf32, #tpu.memory_space<vmem>>, %arg3: memref<8x128xf32, #tpu.memory_space<vmem>>, %arg4: memref<128x1xf32, #tpu.memory_space<vmem>>, %arg5: memref<128x128xbf16, #tpu.memory_space<vmem>>) attributes {dimension_semantics = [#tpu.dimension_semantics<parallel>, #tpu.dimension_semantics<parallel>], iteration_bounds = array<i64: 1, 1>, scalar_prefetch = 0 : i64, scratch_operands = 0 : i64, tpu.core_type = #tpu.core_type<tc>, window_params = [{transform_indices = @transform_0, window_bounds = array<i64: 128, 8>}, {transform_indices = @transform_1, window_bounds = array<i64: 8, 128>}, {transform_indices = @transform_2, window_bounds = array<i64: 128, 1>}, {transform_indices = @transform_3, window_bounds = array<i64: 128, 128>}]} {
    %c0 = arith.constant 0 : index
    %c0_0 = arith.constant 0 : index
    %0 = vector.load %arg2[%c0, %c0_0] : memref<128x8xf32, #tpu.memory_space<vmem>>, vector<128x8xf32>
    %c0_1 = arith.constant 0 : index
    %c0_2 = arith.constant 0 : index
    %1 = vector.load %arg3[%c0_1, %c0_2] : memref<8x128xf32, #tpu.memory_space<vmem>>, vector<8x128xf32>
    %cst = arith.constant dense<0.000000e+00> : vector<128x128xf32>
    %2 = tpu.matmul %0, %1, %cst {dimension_numbers = #tpu.dot_dimension_numbers<[1], [0], [0], [1], [0, 0, 1, 1], [], []>} : vector<128x8xf32>, vector<8x128xf32>, vector<128x128xf32> -> vector<128x128xf32>
    %c0_3 = arith.constant 0 : index
    %c0_4 = arith.constant 0 : index
    %3 = vector.load %arg4[%c0_3, %c0_4] : memref<128x1xf32, #tpu.memory_space<vmem>>, vector<128x1xf32>
    %4 = vector.broadcast %3 : vector<128x1xf32> to vector<128x128xf32>
    %5 = arith.mulf %4, %2 : vector<128x128xf32>
    %6 = arith.truncf %5 : vector<128x128xf32> to vector<128x128xbf16>
    %c0_5 = arith.constant 0 : index
    %c0_6 = arith.constant 0 : index
    %7 = vector.load %arg5[%c0_5, %c0_6] : memref<128x128xbf16, #tpu.memory_space<vmem>>, vector<128x128xbf16>
    tpu.vector_store %arg5[%c0_5, %c0_6], %6 {strides = array<i32>} : memref<128x128xbf16, #tpu.memory_space<vmem>>, vector<128x128xbf16>,
    return
  }
  func.func @transform_0(%arg0: i32, %arg1: i32) -> (i32, i32) {
    %c0_i32 = arith.constant 0 : i32
    %c0_i32_0 = arith.constant 0 : i32
    return %arg0, %c0_i32 : i32, i32
  }
  func.func @transform_1(%arg0: i32, %arg1: i32) -> (i32, i32) {
    %c0_i32 = arith.constant 0 : i32
    %c0_i32_0 = arith.constant 0 : i32
    return %c0_i32, %arg1 : i32, i32
  }
  func.func @transform_2(%arg0: i32, %arg1: i32) -> (i32, i32) {
    %c0_i32 = arith.constant 0 : i32
    %c0_i32_0 = arith.constant 0 : i32
    return %arg0, %c0_i32 : i32, i32
  }
  func.func @transform_3(%arg0: i32, %arg1: i32) -> (i32, i32) {
    %c0_i32 = arith.constant 0 : i32
    return %arg0, %arg1 : i32, i32
  }
}

</mosaic_0001>

<bundles_post_ra>
// kernel: tpu_custom_call.1
= control target key start
LH: loop header
LB: loop body
LE: loop exit
PB: predicated region body
PF: predicated region fallthrough
CT: control target
= control target key end

     0   :  { %vm32_vm0 = vcmask 64512   ;;  %v604_v12 = vmov 0   ;;  %s755_s0 = inlined_call_operand.vmem [shape: f32[128,8], index: 0, kind: input, shape index: {}]   ;;  %s756_s1 = inlined_call_operand.vmem [shape: f32[8,128], index: 1, kind: input, shape index: {}]   ;;  %s757_s2 = inlined_call_operand.vmem [shape: f32[128,1], index: 2, kind: input, shape index: {}]   ;;  %s758_s3 = inlined_call_operand.hbm [shape: bf16[128,128], index: 3, kind: output, shape index: {}]  }
   0x1   :  { %v31_v0 = vld [vmem:[%s756_s1] sm:$0xff]  ;;  %v16_v3 = vld [vmem:[%s755_s0 + $0x8] sm:$0xff]  ;;  %v17_v5 = vld [vmem:[%s755_s0 + $0x10] sm:$0xff]  ;;  %579 = vset.pattern.permute.xlu1 %v604_v12  ;;  %578 = vset.pattern.permute.xlu0 %v604_v12 }
   0x2   :  { %v15_v1 = vld [vmem:[%s755_s0] sm:$0xff]  ;;  %546 = vmatprep.subr.mxu0 %v31_v0  ;;  %572 = vmatprep.subr.mxu1 %v31_v0  ;;  %v24_v4 = vld [vmem:[%s755_s0 + $0x48] sm:$0xff]  ;;  %v25_v6 = vld [vmem:[%s755_s0 + $0x50] sm:$0xff] }
   0x3   :  { %v23_v2 = vld [vmem:[%s755_s0 + $0x40] sm:$0xff]  ;;  %547 = vmatpush3.msra.mxu0 %v31_v0  ;;  %573 = vmatpush3.msra.mxu1 %v31_v0  ;;  %v18_v7 = vld [vmem:[%s755_s0 + $0x18] sm:$0xff]  ;;  %v228_v9 = vld [vmem:[%s757_s2 + $0x10] sm:$0xff] }
   0x4   :  { %548 = vmatprep.mubr.msk.f32.mxu0 %vm32_vm0, %v15_v1  ;;  %560 = vmatprep.mubr.msk.f32.mxu1 %vm32_vm0, %v23_v2  ;;  %v26_v8 = vld [vmem:[%s755_s0 + $0x58] sm:$0xff]  ;;  %v19_v10 = vld [vmem:[%s755_s0 + $0x20] sm:$0xff]  ;;  %v227_v15 = vld [vmem:[%s757_s2 + $0x8] sm:$0xff] }
   0x5   :  { %549 = vmatmul.mubr.msk.f32.vlgmr.msra.gmra.mrb[0].mxu0 %vm32_vm0, %v16_v3  ;;  %561 = vmatmul.mubr.msk.f32.vlgmr.msra.gmra.mrb[0].mxu1 %vm32_vm0, %v24_v4  ;;  %v27_v11 = vld [vmem:[%s755_s0 + $0x60] sm:$0xff]  ;;  %v229_v14 = vld [vmem:[%s757_s2 + $0x18] sm:$0xff]  ;;  %v20_v16 = vld [vmem:[%s755_s0 + $0x28] sm:$0xff] }
   0x6   :  { %551 = vmatprep.mubr.msk.f32.mxu0 %vm32_vm0, %v17_v5  ;;  %563 = vmatprep.mubr.msk.f32.mxu1 %vm32_vm0, %v25_v6  ;;  %v226_v13 = vld [vmem:[%s757_s2] sm:$0xff]  ;;  %v28_v17 = vld [vmem:[%s755_s0 + $0x68] sm:$0xff]  ;;  %v21_v18 = vld [vmem:[%s755_s0 + $0x30] sm:$0xff] }
   0x7   :  { %254 = vperm.xlu1 %579, %v228_v9   ;;  %244 = vperm.xlu0 %578, %v226_v13   ;;  %v29_v19 = vld [vmem:[%s755_s0 + $0x70] sm:$0xff] }
   0x9   :  { %552 = vmatmul.mubr.msk.f32.gmra.mrb[2].mxu0 %vm32_vm0, %v18_v7  ;;  %564 = vmatmul.mubr.msk.f32.gmra.mrb[2].mxu1 %vm32_vm0, %v26_v8 }
   0xa   :  { %554 = vmatprep.mubr.msk.f32.mxu0 %vm32_vm0, %v19_v10  ;;  %566 = vmatprep.mubr.msk.f32.mxu1 %vm32_vm0, %v27_v11 }
   0xb   :  { %259 = vperm.xlu1 %579, %v229_v14   ;;  %249 = vperm.xlu0 %578, %v227_v15  }
   0xc   :  { %8 = vsyncpa [#allocation3], 0  ;;  %v231_v20 = vld [vmem:[%s757_s2 + $0x28] sm:$0xff]  ;;  %v230_v21 = vld [vmem:[%s757_s2 + $0x20] sm:$0xff] }
   0xd   :  { %555 = vmatmul.mubr.msk.f32.gmra.mrb[4].mxu0 %vm32_vm0, %v20_v16  ;;  %567 = vmatmul.mubr.msk.f32.gmra.mrb[4].mxu1 %vm32_vm0, %v28_v17  ;;  %v22_v22 = vld [vmem:[%s755_s0 + $0x38] sm:$0xff]  ;;  %v232_v25 = vld [vmem:[%s757_s2 + $0x30] sm:$0xff]  ;;  %v235_v26 = vld [vmem:[%s757_s2 + $0x48] sm:$0xff] }
   0xe   :  { %557 = vmatprep.mubr.msk.f32.mxu0 %vm32_vm0, %v21_v18  ;;  %569 = vmatprep.mubr.msk.f32.mxu1 %vm32_vm0, %v29_v19  ;;  %v30_v23 = vld [vmem:[%s755_s0 + $0x78] sm:$0xff]  ;;  %v234_v27 = vld [vmem:[%s757_s2 + $0x40] sm:$0xff]  ;;  %v236_v29 = vld [vmem:[%s757_s2 + $0x50] sm:$0xff] }
   0xf   :  { %269 = vperm.xlu1 %579, %v231_v20   ;;  %264 = vperm.xlu0 %578, %v230_v21   ;;  %v233_v24 = vld [vmem:[%s757_s2 + $0x38] sm:$0xff]  ;;  %v239_v30 = vld [vmem:[%s757_s2 + $0x68] sm:$0xff]  ;;  %v238_v31 = vld [vmem:[%s757_s2 + $0x60] sm:$0xff] }
  0x10   :  { %v237_v28 = vld [vmem:[%s757_s2 + $0x58] sm:$0xff]  ;;  %v240_v33 = vld [vmem:[%s757_s2 + $0x70] sm:$0xff] }
  0x11   :  { %558 = vmatmul.mubr.msk.f32.gmra.mrb[6].mxu0 %vm32_vm0, %v22_v22  ;;  %570 = vmatmul.mubr.msk.f32.gmra.mrb[6].mxu1 %vm32_vm0, %v30_v23  ;;  %v241_v32 = vld [vmem:[%s757_s2 + $0x78] sm:$0xff]  ;;  %s605_s2 = smov [#allocation2]  }
  0x12   :  { %s423_s21 = sshll.u32 %s605_s2, 4  ;;  %s424_s21 = int_to_ptr.vmem [resolvable:$true] %s423_s21 }
  0x13   :  { %279 = vperm.xlu1 %579, %v233_v24   ;;  %274 = vperm.xlu0 %578, %v232_v25   ;;  %s580_s1 = scalar_lea.vmem %s424_s21, 1024  ;;  %p585_p1 = scmp.lt.s32.totalorder %s424_s21, %s424_s21 }
  0x14   :  { %p581_p0 = scmp.ne.s32.totalorder %s424_s21, %s580_s1  ;;  %p586_p2 = scmp.lt.s32.totalorder %s580_s1, %s580_s1 }
  0x16   :  { %p587_p3 = por %p586_p2, %p585_p1 }
  0x17   :  { %289 = vperm.xlu1 %579, %v235_v26   ;;  %284 = vperm.xlu0 %578, %v234_v27  }
  0x18   :  { %p588_p4 = pnand %p587_p3, %p581_p0 }
  0x1b   :  { %299 = vperm.xlu1 %579, %v237_v28   ;;  %294 = vperm.xlu0 %578, %v236_v29  }
  0x1f   :  { %309 = vperm.xlu1 %579, %v239_v30   ;;  %304 = vperm.xlu0 %578, %v238_v31  }
  0x23   :  { %319 = vperm.xlu1 %579, %v241_v32   ;;  %314 = vperm.xlu0 %578, %v240_v33  }
  0x86   :  { %v255_v34 = vpop.permute.xlu1 %254  ;;  %v245_v35 = vpop.permute.xlu0 %244 }
  0x8a   :  { %v260_v36 = vpop.permute.xlu1 %259  ;;  %v250_v37 = vpop.permute.xlu0 %249 }
  0x8e   :  { %v270_v38 = vpop.permute.xlu1 %269  ;;  %v265_v39 = vpop.permute.xlu0 %264 }
  0x92   :  { %v280_v40 = vpop.permute.xlu1 %279  ;;  %v275_v41 = vpop.permute.xlu0 %274 }
  0x96   :  { %v290_v42 = vpop.permute.xlu1 %289  ;;  %v285_v43 = vpop.permute.xlu0 %284 }
  0x9a   :  { %v300_v44 = vpop.permute.xlu1 %299  ;;  %v295_v45 = vpop.permute.xlu0 %294 }
  0x9e   :  { %v310_v54 = vpop.permute.xlu1 %309  ;;  %v305_v55 = vpop.permute.xlu0 %304 }
  0xa2   :  { %v320_v12 = vpop.permute.xlu1 %319  ;;  %v315_v13 = vpop.permute.xlu0 %314 }
  0xd8   :  { %v550_v46 = vpop.f32.mrb[0].mxu0  ;;  %v562_v47 = vpop.f32.mrb[0].mxu1 }
  0xd9   :  { %v323_v48 = vmul.f32 %v550_v46, %v250_v37  ;;  %v331_v49 = vmul.f32 %v562_v47, %v290_v42  ;;  %v147_v50 = vpop.f32.mrb[1].mxu0  ;;  %v187_v51 = vpop.f32.mrb[1].mxu1 }
  0xda   :  { %v322_v52 = vmul.f32 %v245_v35, %v147_v50  ;;  %v330_v53 = vmul.f32 %v285_v43, %v187_v51 }
  0xdc   :  { %v485_v56 = vpack.c.bf16 %v323_v48, %v322_v52  ;;  %v505_v57 = vpack.c.bf16 %v331_v49, %v330_v53  ;;  %v553_v58 = vpop.f32.mrb[2].mxu0  ;;  %v565_v59 = vpop.f32.mrb[2].mxu1 }
  0xdd   :  { %v325_v60 = vmul.f32 %v553_v58, %v260_v36  ;;  %v333_v61 = vmul.f32 %v565_v59, %v300_v44  ;;  %v157_v62 = vpop.f32.mrb[3].mxu0  ;;  %v197_v63 = vpop.f32.mrb[3].mxu1 }
  0xde   :  { %486 = vst [vmem:[#allocation2] sm:$0xff] %v485_v56   ;;  %525 = vst [vmem:[#allocation2 + $0x20] sm:$0xff] %v505_v57   ;;  %v324_v0 = vmul.f32 %v255_v34, %v157_v62  ;;  %v332_v1 = vmul.f32 %v295_v45, %v197_v63 }
  0xe0   :  { %v490_v2 = vpack.c.bf16 %v325_v60, %v324_v0  ;;  %v510_v3 = vpack.c.bf16 %v333_v61, %v332_v1  ;;  %v556_v4 = vpop.f32.mrb[4].mxu0  ;;  %v568_v5 = vpop.f32.mrb[4].mxu1 }
  0xe1   :  { %v327_v6 = vmul.f32 %v556_v4, %v270_v38  ;;  %v335_v7 = vmul.f32 %v568_v5, %v310_v54  ;;  %v167_v8 = vpop.f32.mrb[5].mxu0  ;;  %v207_v9 = vpop.f32.mrb[5].mxu1 }
  0xe2   :  { %522 = vst [vmem:[#allocation2 + $0x8] sm:$0xff] %v490_v2   ;;  %526 = vst [vmem:[#allocation2 + $0x28] sm:$0xff] %v510_v3   ;;  %v326_v10 = vmul.f32 %v265_v39, %v167_v8  ;;  %v334_v11 = vmul.f32 %v305_v55, %v207_v9 }
  0xe4   :  { %v495_v14 = vpack.c.bf16 %v327_v6, %v326_v10  ;;  %v515_v15 = vpack.c.bf16 %v335_v7, %v334_v11  ;;  %v559_v16 = vpop.f32.mrb[6].mxu0  ;;  %v571_v17 = vpop.f32.mrb[6].mxu1 }
  0xe5   :  { %v329_v18 = vmul.f32 %v559_v16, %v280_v40  ;;  %v337_v19 = vmul.f32 %v571_v17, %v320_v12  ;;  %v177_v20 = vpop.f32.mrb[7].mxu0  ;;  %v217_v21 = vpop.f32.mrb[7].mxu1 }
  0xe6   :  { %523 = vst [vmem:[#allocation2 + $0x10] sm:$0xff] %v495_v14   ;;  %527 = vst [vmem:[#allocation2 + $0x30] sm:$0xff] %v515_v15   ;;  %v328_v22 = vmul.f32 %v275_v41, %v177_v20  ;;  %v336_v23 = vmul.f32 %v315_v13, %v217_v21 }
  0xe8   :  { %v500_v24 = vpack.c.bf16 %v329_v18, %v328_v22  ;;  %v520_v25 = vpack.c.bf16 %v337_v19, %v336_v23 }
  0xea   :  { %524 = vst [vmem:[#allocation2 + $0x18] sm:$0xff] %v500_v24   ;;  %528 = vst [vmem:[#allocation2 + $0x38] sm:$0xff] %v520_v25  }
  0xeb   :  { %591 = shalt.err (!%p588_p4)
}
  0xec   :  { %s592_s24 = scalar_lea.hbm %s758_s3, 1024 }
  0xed   :  { %p593_p5 = scmp.ne.s32.totalorder %s758_s3, %s592_s24  ;;  %p596_p6 = scmp.lt.u32.totalorder %s592_s24, %s758_s3 }
  0xef   :  { %p598_p7 = pnand %p596_p6, %p593_p5 }
  0xf1   :  { %601 = shalt.err (!%p598_p7)
}
  0xf2   :  { %s606_s29 = smov 64   ;;  %s607_s30 = smov 4  }
  0xf3   :  { %429 = dma.vmem_to_hbm [thread:$0]  %s424_s21, 1024, %s758_s3, [#allocation3], %s606_s29, %s606_s29, %s607_s30  }
  0xf4   :  { %602 = dma.done.wait [#allocation3], 1024  }
  0xf5   :  { %603 = vsyncadd [#allocation3], 4294966272 }
  0xf6   :  { %433 = vsyncpa [#allocation3], 1 }

</bundles_post_ra>
